<compile_context>
chip_gen: v7x
topology: tpu7x:2x2x1
jax: 0.10.0
libtpu: 0.0.40
codegen_flags: <defaults>
</compile_context>

<pallas_src>
import functools

import numpy as np
import jax
import jax.numpy as jnp
from jax.experimental import pallas as pl
from jax.experimental.pallas import tpu as pltpu


# ---------------------------------------------------------------------------
# Static (trace-time) bandwidth planning: group Gaussian kernels whose scales
# are static integer multiples of the widest bandwidth in the group, so the
# EUP runs exp once per group and the other bandwidths come from VPU
# repeated squaring (values are in (0, 1], so squaring is safe).
# ---------------------------------------------------------------------------
def _int_power(base, exponent):
    """base ** exponent (static positive int) via exponentiation by squaring."""
    assert exponent >= 1
    result = None
    cur = base
    e = exponent
    while e > 0:
        if e & 1:
            result = cur if result is None else result * cur
        e >>= 1
        if e:
            cur = cur * cur
    return result


def _group_plan(values):
    """values: static positive floats; scale_u = base_scale * (v_ref / v_u).

    Returns (v_ref, [(multiplier, int_exponent_or_None), ...]) where v_ref is
    the largest value (widest bandwidth -> smallest |scale|).
    """
    v_ref = max(values)
    plan = []
    for v in values:
        m = v_ref / v
        mi = int(round(m))
        plan.append((m, mi if (mi >= 1 and abs(m - mi) <= 1e-9 * m) else None))
    return v_ref, plan


def _add_group_sums(sums, d_tiles, base_scale, plan):
    """Accumulate sum(exp(d * base_scale * m_u)) per distance tile, reusing the
    base exp via repeated squaring when m_u is an integer."""
    bases = [jnp.exp(t * base_scale) for t in d_tiles]
    out = list(sums)
    for m, mi in plan:
        for i, (tile, base) in enumerate(zip(d_tiles, bases)):
            if mi is not None:
                k = base if mi == 1 else _int_power(base, mi)
            else:
                k = jnp.exp(tile * (base_scale * jnp.float32(m)))
            out[i] = out[i] + jnp.sum(k)
    return out


def _multi_kernel_tile_sums(kernel_cfgs, d_tiles, mean_d):
    """For each distance tile, sum_u sum(exp(-d / (2*sigma_u^2))) as a scalar."""
    sums = [jnp.float32(0.0)] * len(d_tiles)
    track_alphas = [float(a) for (a, s, t) in kernel_cfgs if t]
    fixed_sigsq = [float(s) * float(s) for (a, s, t) in kernel_cfgs if not t]
    if track_alphas:
        a_ref, plan = _group_plan(track_alphas)
        # sigma_u^2 = alpha_u * mean(D); one exact scalar divide per group,
        # hoisted out of the elementwise epilogue.
        base_scale = jnp.float32(-0.5 / a_ref) / mean_d
        sums = _add_group_sums(sums, d_tiles, base_scale, plan)
    if fixed_sigsq:
        s_ref, plan = _group_plan(fixed_sigsq)
        base_scale = jnp.float32(-0.5 / s_ref)
        sums = _add_group_sums(sums, d_tiles, base_scale, plan)
    return sums


def _closed_form_mean_d(xs_f, xt_f, sq_s, sq_t, batch_size):
    """mean_{ij} ||f_i - f_j||^2 = (2/n) sum_i ||f_i||^2 - (2/n^2) ||sum_i f_i||^2."""
    n = 2 * batch_size
    sum_sq = jnp.sum(sq_s) + jnp.sum(sq_t)
    col_sum = (jnp.sum(xs_f, axis=0, keepdims=True)
               + jnp.sum(xt_f, axis=0, keepdims=True))          # (1, F)
    return (2.0 / float(n)) * sum_sq - (2.0 / float(n * n)) * jnp.sum(col_sum * col_sum)


# ---------------------------------------------------------------------------
# Kernel bodies
# ---------------------------------------------------------------------------
def _mkmmd_dense_kernel(kernel_cfgs, batch_size, xs_ref, xt_ref, loss_ref):
    """linear=False path: Gram/D quadrants -> per-bandwidth scalar quadrant sums."""
    b = batch_size
    xs = xs_ref[...]                                   # native dtype to the MXU
    xt = xt_ref[...]
    xs_f = xs.astype(jnp.float32)
    xt_f = xt.astype(jnp.float32)

    sq_s = jnp.sum(xs_f * xs_f, axis=1, keepdims=True)  # (B, 1)
    sq_t = jnp.sum(xt_f * xt_f, axis=1, keepdims=True)

    # Gram quadrants: contract dim 1 of both operands (x @ y.T) with f32 accum.
    # TODO(synk): at large shapes, check the Mosaic dump for a hidden vxpose on
    # the RHS and switch to pl.dot(..., trans_b=True) / bf16 feed if needed.
    dims = (((1,), (1,)), ((), ()))
    g_ss = jax.lax.dot_general(xs, xs, dims, preferred_element_type=jnp.float32)
    g_tt = jax.lax.dot_general(xt, xt, dims, preferred_element_type=jnp.float32)
    g_st = jax.lax.dot_general(xs, xt, dims, preferred_element_type=jnp.float32)

    d_ss = jnp.maximum(sq_s + sq_s.T - 2.0 * g_ss, 0.0)   # (B, B)
    d_tt = jnp.maximum(sq_t + sq_t.T - 2.0 * g_tt, 0.0)
    d_st = jnp.maximum(sq_s + sq_t.T - 2.0 * g_st, 0.0)

    # Running-stat bandwidth uses mean over the full (2B,2B) D: closed form.
    mean_d = _closed_form_mean_d(xs_f, xt_f, sq_s, sq_t, b)

    s_ss, s_tt, s_st = _multi_kernel_tile_sums(
        kernel_cfgs, [d_ss, d_tt, d_st], mean_d)

    # sum(K * index_matrix) decomposed:
    #  * within-domain quadrants: weight 1/(B(B-1)) on off-diagonal entries; the
    #    diagonal of each within-domain quadrant is exp(0)=1 per kernel, so
    #    subtract num_kernels * B (matches the PyTorch reference exactly).
    #  * cross-domain quadrants: weight -1/B^2 on every entry; K_ts = K_st^T.
    num_k = len(kernel_cfgs)
    w_within = 1.0 / float(b * (b - 1))
    w_cross = 1.0 / float(b * b)
    loss = (w_within * (s_ss - float(num_k * b))
            + w_within * (s_tt - float(num_k * b))
            - 2.0 * w_cross * s_st
            + 2.0 / float(b - 1))
    loss_ref[0] = loss.astype(jnp.float32)


def _mkmmd_linear_kernel(kernel_cfgs, batch_size, xs_ref, xt_ref, loss_ref):
    """linear=True path: only the 4B rolled pairs are needed -> O(B*F) work."""
    b = batch_size
    xs_f = xs_ref[...].astype(jnp.float32)
    xt_f = xt_ref[...].astype(jnp.float32)

    sq_s = jnp.sum(xs_f * xs_f, axis=1, keepdims=True)
    sq_t = jnp.sum(xt_f * xt_f, axis=1, keepdims=True)
    # track_running_stats sigma^2 still uses the mean of the FULL (2B,2B)
    # distance matrix; closed form avoids ever materializing it.
    mean_d = _closed_form_mean_d(xs_f, xt_f, sq_s, sq_t, b)

    # Shifted rows on the XLU: row i -> row (i+1) % B.
    xs_n = pltpu.roll(xs_f, shift=b - 1, axis=0)
    xt_n = pltpu.roll(xt_f, shift=b - 1, axis=0)

    d_ss = jnp.sum((xs_f - xs_n) ** 2, axis=1, keepdims=True)  # ||s_i - s_{i+1}||^2
    d_tt = jnp.sum((xt_f - xt_n) ** 2, axis=1, keepdims=True)  # ||t_i - t_{i+1}||^2
    d_st = jnp.sum((xs_f - xt_n) ** 2, axis=1, keepdims=True)  # ||s_i - t_{i+1}||^2
    d_ts = jnp.sum((xs_n - xt_f) ** 2, axis=1, keepdims=True)  # ||s_{i+1} - t_i||^2

    s_ss, s_tt, s_st, s_ts = _multi_kernel_tile_sums(
        kernel_cfgs, [d_ss, d_tt, d_st, d_ts], mean_d)

    loss = (s_ss + s_tt - s_st - s_ts) / float(b) + 2.0 / float(b - 1)
    loss_ref[0] = loss.astype(jnp.float32)


# ---------------------------------------------------------------------------
# Wrapper
# ---------------------------------------------------------------------------
def mk_mmd_loss(z_s, z_t, kernel_cfgs, linear=False):
    """Pallas implementation of MultipleKernelMaximumMeanDiscrepancy.forward.

    Args:
      z_s, z_t: (B, F) source / target features (same shape).
      kernel_cfgs: sequence of (alpha, sigma, track_running_stats) per Gaussian
        kernel (sigma may be None when track_running_stats=True).
      linear: linear-DAN variant.
    Returns:
      scalar MK-MMD loss (float32).
    """
    assert z_s.shape == z_t.shape and z_s.ndim == 2
    b, f = z_s.shape
    cfgs = tuple((float(a), None if s is None else float(s), bool(t))
                 for (a, s, t) in kernel_cfgs)
    body = _mkmmd_linear_kernel if linear else _mkmmd_dense_kernel
    kernel = functools.partial(body, cfgs, b)

    # Rough live-VMEM estimate (D quadrants + exp bases + temps + double-buffered
    # inputs); only raise the scoped limit beyond the default when needed.
    est_bytes = 4 * (8 * b * b + 8 * b * f)
    call_kwargs = {}
    if est_bytes > 32 * 1024 * 1024:
        # TODO(synk): beyond ~2B≈1.2k on v7x switch to an (i,j)-tiled grid with
        # dimension_semantics=("parallel", ...) instead of only raising the limit.
        call_kwargs["compiler_params"] = pltpu.CompilerParams(
            vmem_limit_bytes=min(est_bytes * 2, 100 * 1024 * 1024))

    loss = pl.pallas_call(
        kernel,
        out_shape=jax.ShapeDtypeStruct((1,), jnp.float32),
        in_specs=[
            pl.BlockSpec((b, f), lambda: (0, 0)),            # z_s (VMEM)
            pl.BlockSpec((b, f), lambda: (0, 0)),            # z_t (VMEM)
        ],
        out_specs=pl.BlockSpec(memory_space=pltpu.SMEM),     # scalar loss
        **call_kwargs,
    )(z_s, z_t)
    return loss[0]


# ---------------------------------------------------------------------------
# Reference (validation only) — literal mirror of the PyTorch forward.
# ---------------------------------------------------------------------------
def _update_index_matrix(batch_size, linear=False):
    n = 2 * batch_size
    m = np.zeros((n, n), dtype=np.float32)
    if linear:
        for i in range(batch_size):
            s1, s2 = i, (i + 1) % batch_size
            t1, t2 = s1 + batch_size, s2 + batch_size
            m[s1, s2] = 1.0 / float(batch_size)
            m[t1, t2] = 1.0 / float(batch_size)
            m[s1, t2] = -1.0 / float(batch_size)
            m[s2, t1] = -1.0 / float(batch_size)
    else:
        for i in range(batch_size):
            for j in range(batch_size):
                if i != j:
                    v = 1.0 / float(batch_size * (batch_size - 1))
                    m[i, j] = v
                    m[i + batch_size, j + batch_size] = v
        for i in range(batch_size):
            for j in range(batch_size):
                v = -1.0 / float(batch_size * batch_size)
                m[i, j + batch_size] = v
                m[i + batch_size, j] = v
    return m


def _reference_loss(z_s, z_t, kernel_cfgs, linear=False):
    features = jnp.concatenate([z_s, z_t], axis=0).astype(jnp.float32)
    b = z_s.shape[0]
    d = jnp.sum((features[None, :, :] - features[:, None, :]) ** 2, axis=2)
    kmat = jnp.zeros_like(d)
    for alpha, sigma, track in kernel_cfgs:
        if track:
            sigma_sq = alpha * jnp.mean(d)
        else:
            sigma_sq = jnp.float32(sigma * sigma)
        kmat = kmat + jnp.exp(-d / (2.0 * sigma_sq))
    idx = jnp.asarray(_update_index_matrix(b, linear), jnp.float32)
    return jnp.sum(kmat * idx) + 2.0 / float(b - 1)


if __name__ == "__main__":
    key = jax.random.PRNGKey(0)
    batch, feat = 8, 32
    k_s, k_t = jax.random.split(key)
    z_s = jax.random.normal(k_s, (batch, feat), dtype=jnp.float32)
    z_t = jax.random.normal(k_t, (batch, feat), dtype=jnp.float32)

    # 1) Module-typical config: geometric alpha family -> repeated-squaring path.
    kernels_track = ((0.5, None, True), (1.0, None, True), (2.0, None, True))
    loss = mk_mmd_loss(z_s, z_t, kernels_track, linear=False)
    jax.block_until_ready(loss)
    ref = _reference_loss(z_s, z_t, kernels_track, linear=False)
    assert jnp.allclose(loss, ref, rtol=1e-4, atol=1e-4), (loss, ref)

    # 2) linear-DAN variant (rolled-pair kernel).
    loss_lin = mk_mmd_loss(z_s, z_t, kernels_track, linear=True)
    jax.block_until_ready(loss_lin)
    ref_lin = _reference_loss(z_s, z_t, kernels_track, linear=True)
    assert jnp.allclose(loss_lin, ref_lin, rtol=1e-4, atol=1e-4), (loss_lin, ref_lin)

    # 3) Fixed-sigma kernels (track_running_stats=False), integer sigma^2 ratios.
    kernels_fixed = ((1.0, 1.5, False), (1.0, 3.0, False))
    loss_fix = mk_mmd_loss(z_s, z_t, kernels_fixed, linear=False)
    jax.block_until_ready(loss_fix)
    ref_fix = _reference_loss(z_s, z_t, kernels_fixed, linear=False)
    assert jnp.allclose(loss_fix, ref_fix, rtol=1e-4, atol=1e-4), (loss_fix, ref_fix)

    # 4) Mixed groups + a non-integer scale ratio (exercises the exp fallback).
    kernels_mixed = ((2.0, None, True), (0.7, None, True), (1.0, 2.0, False))
    loss_mix = mk_mmd_loss(z_s, z_t, kernels_mixed, linear=False)
    jax.block_until_ready(loss_mix)
    ref_mix = _reference_loss(z_s, z_t, kernels_mixed, linear=False)
    assert jnp.allclose(loss_mix, ref_mix, rtol=1e-4, atol=1e-4), (loss_mix, ref_mix)

    print("KERNEL_OK")
</pallas_src>

<mosaic_0001>
module attributes {stable_mosaic.version = 11 : i64} {
  func.func @_mkmmd_dense_kernel(%arg0: memref<8x32xf32, #tpu.memory_space<vmem>>, %arg1: memref<8x32xf32, #tpu.memory_space<vmem>>, %arg2: memref<1xf32, #tpu.memory_space<smem>>) attributes {dimension_semantics = [], scalar_prefetch = 0 : i64, scratch_operands = 0 : i64, tpu.core_type = #tpu.core_type<tc>} {
    %c0 = arith.constant 0 : index
    %c0_0 = arith.constant 0 : index
    %0 = vector.load %arg0[%c0, %c0_0] : memref<8x32xf32, #tpu.memory_space<vmem>>, vector<8x32xf32>
    %c0_1 = arith.constant 0 : index
    %c0_2 = arith.constant 0 : index
    %1 = vector.load %arg1[%c0_1, %c0_2] : memref<8x32xf32, #tpu.memory_space<vmem>>, vector<8x32xf32>
    %2 = arith.mulf %0, %0 : vector<8x32xf32>
    %cst = arith.constant dense<0.000000e+00> : vector<8xf32>
    %3 = vector.multi_reduction <add>, %2, %cst [1] : vector<8x32xf32> to vector<8xf32>
    %4 = vector.shape_cast %3 : vector<8xf32> to vector<8x1xf32>
    %5 = arith.mulf %1, %1 : vector<8x32xf32>
    %cst_3 = arith.constant dense<0.000000e+00> : vector<8xf32>
    %6 = vector.multi_reduction <add>, %5, %cst_3 [1] : vector<8x32xf32> to vector<8xf32>
    %7 = vector.shape_cast %6 : vector<8xf32> to vector<8x1xf32>
    %cst_4 = arith.constant dense<0.000000e+00> : vector<8x8xf32>
    %8 = tpu.matmul %0, %0, %cst_4 {dimension_numbers = #tpu.dot_dimension_numbers<[1], [1], [0], [0], [0, 0, 1, 0], [], []>} : vector<8x32xf32>, vector<8x32xf32>, vector<8x8xf32> -> vector<8x8xf32>
    %cst_5 = arith.constant dense<0.000000e+00> : vector<8x8xf32>
    %9 = tpu.matmul %1, %1, %cst_5 {dimension_numbers = #tpu.dot_dimension_numbers<[1], [1], [0], [0], [0, 0, 1, 0], [], []>} : vector<8x32xf32>, vector<8x32xf32>, vector<8x8xf32> -> vector<8x8xf32>
    %cst_6 = arith.constant dense<0.000000e+00> : vector<8x8xf32>
    %10 = tpu.matmul %0, %1, %cst_6 {dimension_numbers = #tpu.dot_dimension_numbers<[1], [1], [0], [0], [0, 0, 1, 0], [], []>} : vector<8x32xf32>, vector<8x32xf32>, vector<8x8xf32> -> vector<8x8xf32>
    %11 = tpu.transpose %4, [1, 0] : vector<8x1xf32> -> vector<1x8xf32>
    %12 = vector.broadcast %4 : vector<8x1xf32> to vector<8x8xf32>
    %13 = vector.broadcast %11 : vector<1x8xf32> to vector<8x8xf32>
    %14 = arith.addf %12, %13 : vector<8x8xf32>
    %cst_7 = arith.constant 2.000000e+00 : f32
    %15 = vector.broadcast %cst_7 : f32 to vector<8x8xf32>
    %16 = arith.mulf %15, %8 : vector<8x8xf32>
    %17 = arith.subf %14, %16 : vector<8x8xf32>
    %cst_8 = arith.constant 0.000000e+00 : f32
    %18 = vector.broadcast %cst_8 : f32 to vector<8x8xf32>
    %19 = arith.maximumf %17, %18 : vector<8x8xf32>
    %20 = tpu.transpose %7, [1, 0] : vector<8x1xf32> -> vector<1x8xf32>
    %21 = vector.broadcast %7 : vector<8x1xf32> to vector<8x8xf32>
    %22 = vector.broadcast %20 : vector<1x8xf32> to vector<8x8xf32>
    %23 = arith.addf %21, %22 : vector<8x8xf32>
    %cst_9 = arith.constant 2.000000e+00 : f32
    %24 = vector.broadcast %cst_9 : f32 to vector<8x8xf32>
    %25 = arith.mulf %24, %9 : vector<8x8xf32>
    %26 = arith.subf %23, %25 : vector<8x8xf32>
    %cst_10 = arith.constant 0.000000e+00 : f32
    %27 = vector.broadcast %cst_10 : f32 to vector<8x8xf32>
    %28 = arith.maximumf %26, %27 : vector<8x8xf32>
    %29 = tpu.transpose %7, [1, 0] : vector<8x1xf32> -> vector<1x8xf32>
    %30 = vector.broadcast %4 : vector<8x1xf32> to vector<8x8xf32>
    %31 = vector.broadcast %29 : vector<1x8xf32> to vector<8x8xf32>
    %32 = arith.addf %30, %31 : vector<8x8xf32>
    %cst_11 = arith.constant 2.000000e+00 : f32
    %33 = vector.broadcast %cst_11 : f32 to vector<8x8xf32>
    %34 = arith.mulf %33, %10 : vector<8x8xf32>
    %35 = arith.subf %32, %34 : vector<8x8xf32>
    %cst_12 = arith.constant 0.000000e+00 : f32
    %36 = vector.broadcast %cst_12 : f32 to vector<8x8xf32>
    %37 = arith.maximumf %35, %36 : vector<8x8xf32>
    %38 = vector.shape_cast %4 : vector<8x1xf32> to vector<1x8x1xf32>
    %cst_13 = arith.constant dense<0.000000e+00> : vector<1xf32>
    %39 = vector.multi_reduction <add>, %38, %cst_13 [1, 2] : vector<1x8x1xf32> to vector<1xf32>
    %40 = vector.shape_cast %39 : vector<1xf32> to vector<1x1x1xf32>
    %41 = vector.extract %40[0, 0, 0] : f32 from vector<1x1x1xf32>
    %42 = vector.shape_cast %7 : vector<8x1xf32> to vector<1x8x1xf32>
    %cst_14 = arith.constant dense<0.000000e+00> : vector<1xf32>
    %43 = vector.multi_reduction <add>, %42, %cst_14 [1, 2] : vector<1x8x1xf32> to vector<1xf32>
    %44 = vector.shape_cast %43 : vector<1xf32> to vector<1x1x1xf32>
    %45 = vector.extract %44[0, 0, 0] : f32 from vector<1x1x1xf32>
    %46 = arith.addf %41, %45 : f32
    %cst_15 = arith.constant dense<0.000000e+00> : vector<32xf32>
    %47 = vector.multi_reduction <add>, %0, %cst_15 [0] : vector<8x32xf32> to vector<32xf32>
    %48 = vector.shape_cast %47 : vector<32xf32> to vector<1x32xf32>
    %cst_16 = arith.constant dense<0.000000e+00> : vector<32xf32>
    %49 = vector.multi_reduction <add>, %1, %cst_16 [0] : vector<8x32xf32> to vector<32xf32>
    %50 = vector.shape_cast %49 : vector<32xf32> to vector<1x32xf32>
    %51 = arith.addf %48, %50 : vector<1x32xf32>
    %cst_17 = arith.constant 1.250000e-01 : f32
    %52 = arith.mulf %cst_17, %46 : f32
    %53 = arith.mulf %51, %51 : vector<1x32xf32>
    %54 = vector.shape_cast %53 : vector<1x32xf32> to vector<1x1x32xf32>
    %cst_18 = arith.constant dense<0.000000e+00> : vector<1xf32>
    %55 = vector.multi_reduction <add>, %54, %cst_18 [1, 2] : vector<1x1x32xf32> to vector<1xf32>
    %56 = vector.shape_cast %55 : vector<1xf32> to vector<1x1x1xf32>
    %57 = vector.extract %56[0, 0, 0] : f32 from vector<1x1x1xf32>
    %cst_19 = arith.constant 7.812500e-03 : f32
    %58 = arith.mulf %cst_19, %57 : f32
    %59 = arith.subf %52, %58 : f32
    %cst_20 = arith.constant -2.500000e-01 : f32
    %60 = arith.divf %cst_20, %59 : f32
    %61 = vector.broadcast %60 : f32 to vector<8x8xf32>
    %62 = arith.mulf %19, %61 : vector<8x8xf32>
    %63 = math.exp %62 : vector<8x8xf32>
    %64 = vector.broadcast %60 : f32 to vector<8x8xf32>
    %65 = arith.mulf %28, %64 : vector<8x8xf32>
    %66 = math.exp %65 : vector<8x8xf32>
    %67 = vector.broadcast %60 : f32 to vector<8x8xf32>
    %68 = arith.mulf %37, %67 : vector<8x8xf32>
    %69 = math.exp %68 : vector<8x8xf32>
    %70 = arith.mulf %63, %63 : vector<8x8xf32>
    %71 = arith.mulf %70, %70 : vector<8x8xf32>
    %72 = vector.shape_cast %71 : vector<8x8xf32> to vector<1x8x8xf32>
    %cst_21 = arith.constant dense<0.000000e+00> : vector<1xf32>
    %73 = vector.multi_reduction <add>, %72, %cst_21 [1, 2] : vector<1x8x8xf32> to vector<1xf32>
    %74 = vector.shape_cast %73 : vector<1xf32> to vector<1x1x1xf32>
    %75 = vector.extract %74[0, 0, 0] : f32 from vector<1x1x1xf32>
    %cst_22 = arith.constant 0.000000e+00 : f32
    %76 = arith.addf %cst_22, %75 : f32
    %77 = arith.mulf %66, %66 : vector<8x8xf32>
    %78 = arith.mulf %77, %77 : vector<8x8xf32>
    %79 = vector.shape_cast %78 : vector<8x8xf32> to vector<1x8x8xf32>
    %cst_23 = arith.constant dense<0.000000e+00> : vector<1xf32>
    %80 = vector.multi_reduction <add>, %79, %cst_23 [1, 2] : vector<1x8x8xf32> to vector<1xf32>
    %81 = vector.shape_cast %80 : vector<1xf32> to vector<1x1x1xf32>
    %82 = vector.extract %81[0, 0, 0] : f32 from vector<1x1x1xf32>
    %cst_24 = arith.constant 0.000000e+00 : f32
    %83 = arith.addf %cst_24, %82 : f32
    %84 = arith.mulf %69, %69 : vector<8x8xf32>
    %85 = arith.mulf %84, %84 : vector<8x8xf32>
    %86 = vector.shape_cast %85 : vector<8x8xf32> to vector<1x8x8xf32>
    %cst_25 = arith.constant dense<0.000000e+00> : vector<1xf32>
    %87 = vector.multi_reduction <add>, %86, %cst_25 [1, 2] : vector<1x8x8xf32> to vector<1xf32>
    %88 = vector.shape_cast %87 : vector<1xf32> to vector<1x1x1xf32>
    %89 = vector.extract %88[0, 0, 0] : f32 from vector<1x1x1xf32>
    %cst_26 = arith.constant 0.000000e+00 : f32
    %90 = arith.addf %cst_26, %89 : f32
    %91 = arith.mulf %63, %63 : vector<8x8xf32>
    %92 = vector.shape_cast %91 : vector<8x8xf32> to vector<1x8x8xf32>
    %cst_27 = arith.constant dense<0.000000e+00> : vector<1xf32>
    %93 = vector.multi_reduction <add>, %92, %cst_27 [1, 2] : vector<1x8x8xf32> to vector<1xf32>
    %94 = vector.shape_cast %93 : vector<1xf32> to vector<1x1x1xf32>
    %95 = vector.extract %94[0, 0, 0] : f32 from vector<1x1x1xf32>
    %96 = arith.addf %76, %95 : f32
    %97 = arith.mulf %66, %66 : vector<8x8xf32>
    %98 = vector.shape_cast %97 : vector<8x8xf32> to vector<1x8x8xf32>
    %cst_28 = arith.constant dense<0.000000e+00> : vector<1xf32>
    %99 = vector.multi_reduction <add>, %98, %cst_28 [1, 2] : vector<1x8x8xf32> to vector<1xf32>
    %100 = vector.shape_cast %99 : vector<1xf32> to vector<1x1x1xf32>
    %101 = vector.extract %100[0, 0, 0] : f32 from vector<1x1x1xf32>
    %102 = arith.addf %83, %101 : f32
    %103 = arith.mulf %69, %69 : vector<8x8xf32>
    %104 = vector.shape_cast %103 : vector<8x8xf32> to vector<1x8x8xf32>
    %cst_29 = arith.constant dense<0.000000e+00> : vector<1xf32>
    %105 = vector.multi_reduction <add>, %104, %cst_29 [1, 2] : vector<1x8x8xf32> to vector<1xf32>
    %106 = vector.shape_cast %105 : vector<1xf32> to vector<1x1x1xf32>
    %107 = vector.extract %106[0, 0, 0] : f32 from vector<1x1x1xf32>
    %108 = arith.addf %90, %107 : f32
    %109 = vector.shape_cast %63 : vector<8x8xf32> to vector<1x8x8xf32>
    %cst_30 = arith.constant dense<0.000000e+00> : vector<1xf32>
    %110 = vector.multi_reduction <add>, %109, %cst_30 [1, 2] : vector<1x8x8xf32> to vector<1xf32>
    %111 = vector.shape_cast %110 : vector<1xf32> to vector<1x1x1xf32>
    %112 = vector.extract %111[0, 0, 0] : f32 from vector<1x1x1xf32>
    %113 = arith.addf %96, %112 : f32
    %114 = vector.shape_cast %66 : vector<8x8xf32> to vector<1x8x8xf32>
    %cst_31 = arith.constant dense<0.000000e+00> : vector<1xf32>
    %115 = vector.multi_reduction <add>, %114, %cst_31 [1, 2] : vector<1x8x8xf32> to vector<1xf32>
    %116 = vector.shape_cast %115 : vector<1xf32> to vector<1x1x1xf32>
    %117 = vector.extract %116[0, 0, 0] : f32 from vector<1x1x1xf32>
    %118 = arith.addf %102, %117 : f32
    %119 = vector.shape_cast %69 : vector<8x8xf32> to vector<1x8x8xf32>
    %cst_32 = arith.constant dense<0.000000e+00> : vector<1xf32>
    %120 = vector.multi_reduction <add>, %119, %cst_32 [1, 2] : vector<1x8x8xf32> to vector<1xf32>
    %121 = vector.shape_cast %120 : vector<1xf32> to vector<1x1x1xf32>
    %122 = vector.extract %121[0, 0, 0] : f32 from vector<1x1x1xf32>
    %123 = arith.addf %108, %122 : f32
    %cst_33 = arith.constant 2.400000e+01 : f32
    %124 = arith.subf %113, %cst_33 : f32
    %cst_34 = arith.constant 0.0178571437 : f32
    %125 = arith.mulf %cst_34, %124 : f32
    %cst_35 = arith.constant 2.400000e+01 : f32
    %126 = arith.subf %118, %cst_35 : f32
    %cst_36 = arith.constant 0.0178571437 : f32
    %127 = arith.mulf %cst_36, %126 : f32
    %128 = arith.addf %125, %127 : f32
    %cst_37 = arith.constant 3.125000e-02 : f32
    %129 = arith.mulf %cst_37, %123 : f32
    %130 = arith.subf %128, %129 : f32
    %cst_38 = arith.constant 0.285714298 : f32
    %131 = arith.addf %130, %cst_38 : f32
    %c0_39 = arith.constant 0 : index
    %132 = memref.load %arg2[%c0_39] : memref<1xf32, #tpu.memory_space<smem>>
    memref.store %131, %arg2[%c0_39] : memref<1xf32, #tpu.memory_space<smem>>
    return
  }
}

</mosaic_0001>

<bundles_post_ra>
// kernel: tpu_custom_call.1
= control target key start
LH: loop header
LB: loop body
LE: loop exit
PB: predicated region body
PF: predicated region fallthrough
CT: control target
= control target key end

     0   :  { %7 = vsyncpa [#allocation3], 0  ;;  %s750_s0 = inlined_call_operand.hbm [shape: f32[8,32], index: 0, kind: input, shape index: {}]   ;;  %s751_s1 = inlined_call_operand.hbm [shape: f32[8,32], index: 1, kind: input, shape index: {}]   ;;  %s752_s2 = inlined_call_operand.hbm [shape: f32[1], index: 2, kind: output, shape index: {}]  }
   0x1   :  { %8 = vsyncpa [#allocation6], 0 }
   0x2   :  { %9 = vsyncpa [#allocation4], 0  ;;  %s672_s9 = smov [#allocation2]   ;;  %s673_s11 = smov [#allocation5]  }
   0x3   :  { %s16_s10 = sshll.u32 %s672_s9, 4  ;;  %s26_s12 = sshll.u32 %s673_s11, 4  ;;  %s17_s10 = int_to_ptr.vmem [resolvable:$true] %s16_s10  ;;  %s27_s12 = int_to_ptr.vmem [resolvable:$true] %s26_s12 }
   0x4   :  { %s612_s15 = scalar_lea.hbm %s750_s0, 128 }
   0x5   :  { %p613_p0 = scmp.ne.s32.totalorder %s750_s0, %s612_s15  ;;  %p616_p1 = scmp.lt.u32.totalorder %s612_s15, %s750_s0 }
   0x7   :  { %p618_p2 = pnand %p616_p1, %p613_p0 }
   0x9   :  { %621 = shalt.err (!%p618_p2)
}
   0xa   :  { %s622_s20 = scalar_lea.vmem %s17_s10, 128  ;;  %p627_p4 = scmp.lt.s32.totalorder %s17_s10, %s17_s10 }
   0xb   :  { %p623_p3 = scmp.ne.s32.totalorder %s17_s10, %s622_s20  ;;  %p628_p5 = scmp.lt.s32.totalorder %s622_s20, %s622_s20 }
   0xd   :  { %p629_p6 = por %p628_p5, %p627_p4 }
   0xf   :  { %p630_p7 = pnand %p629_p6, %p623_p3 }
  0x11   :  { %633 = shalt.err (!%p630_p7)
}
  0x12   :  { %19 = dma.hbm_to_vmem [thread:$0]  %s750_s0, 128, %s17_s10, [#allocation3]  }
  0x13   :  { %s634_s25 = scalar_lea.hbm %s751_s1, 128 }
  0x14   :  { %p635_p8 = scmp.ne.s32.totalorder %s751_s1, %s634_s25  ;;  %p638_p9 = scmp.lt.u32.totalorder %s634_s25, %s751_s1 }
  0x16   :  { %p640_p10 = pnand %p638_p9, %p635_p8 }
  0x18   :  { %643 = shalt.err (!%p640_p10)
}
  0x19   :  { %s644_s30 = scalar_lea.vmem %s27_s12, 128  ;;  %p649_p12 = scmp.lt.s32.totalorder %s27_s12, %s27_s12 }
  0x1a   :  { %p645_p11 = scmp.ne.s32.totalorder %s27_s12, %s644_s30  ;;  %p650_p13 = scmp.lt.s32.totalorder %s644_s30, %s644_s30 }
  0x1c   :  { %p651_p0 = por %p650_p13, %p649_p12 }
  0x1e   :  { %p652_p1 = pnand %p651_p0, %p645_p11 }
  0x20   :  { %655 = shalt.err (!%p652_p1)
}
  0x21   :  { %29 = dma.hbm_to_vmem [thread:$0]  %s751_s1, 128, %s27_s12, [#allocation6]  }
  0x22   :  { %666 = dma.done.wait [#allocation3], 128  }
  0x23   :  { %667 = vsyncadd [#allocation3], 4294967168 }
  0x24   :  { %668 = dma.done.wait [#allocation6], 128  }
  0x25   :  { %669 = vsyncadd [#allocation6], 4294967168  ;;  %v674_v0 = vmov 0.0   ;;  %vm675_vm0 = vmmov 0   ;;  %v36_v1 = vld [vmem:[#allocation2] sm:$0xff]  ;;  %vm39_vm1 = vcmask 261120   ;;  %v295_v57 = vlaneseq }
  0x26   :  { %558 = vmatprep.subr.mxu0 %v674_v0  ;;  %560 = vmatprep.mubr.msk.f32.mxu0 %vm675_vm0, %v674_v0  ;;  %v37_v2 = vld [vmem:[#allocation5] sm:$0xff]  ;;  %v38_v3 = vmul.f32 %v36_v1, %v36_v1  ;;  %v369_v5 = vsel %vm39_vm1, %v36_v1, 0.0  ;;  %vm386_vm2 = vcmask 253952   ;;  %vm347_vm3 = vcmask 7168  }
  0x27   :  { %563 = vmatprep.subr.mxu1 %v674_v0  ;;  %565 = vmatprep.mubr.msk.f32.mxu1 %vm675_vm0, %v674_v0  ;;  %v43_v4 = vmul.f32 %v37_v2, %v37_v2  ;;  %v376_v6 = vsel %vm39_vm1, %v37_v2, 0.0  ;;  %v370_v7 = vrot.slane %v369_v5, 4  ;;  %v296_v58 = vshrl.u32 %v295_v57, 7 }
  0x28   :  { %559 = vmatpush3.xpose.msk.msra.mxu0 %vm39_vm1, %v36_v1  ;;  %564 = vmatpush3.xpose.msk.msra.mxu1 %vm39_vm1, %v37_v2  ;;  %v377_v8 = vrot.slane %v376_v6, 4  ;;  %v40_v9 = vsel %vm39_vm1, %v38_v3, 0.0  ;;  %vm415_vm4 = vcmask 64512  }
  0x29   :  { %568 = vmatprep.subr.mxu0 %v674_v0  ;;  %41 = vadd.xlane.f32.xlu0 %v40_v9  ;;  %v371_v10 = vadd.f32 %v370_v7, %v369_v5  ;;  %v44_v12 = vsel %vm39_vm1, %v43_v4, 0.0  ;;  %v297_v59 = vsub.s32 0, %v296_v58 }
  0x2a   :  { %v378_v11 = vadd.f32 %v377_v8, %v376_v6 }
  0x2b   :  { %561 = vmatmul.mubr.msk.f32.vlgmr.msra.gmra.mrb[0].mxu0 %vm39_vm1, %v36_v1  ;;  %566 = vmatmul.mubr.msk.f32.vlgmr.msra.gmra.mrb[0].mxu1 %vm39_vm1, %v37_v2  ;;  %v372_v13 = vrot.slane %v371_v10, 2 }
  0x2c   :  { %569 = vmatpush3.xpose.msk.msra.mxu0 %vm39_vm1, %v37_v2  ;;  %570 = vmatprep.mubr.msk.f32.mxu0 %vm675_vm0, %v674_v0  ;;  %v379_v14 = vrot.slane %v378_v11, 2 }
  0x2d   :  { %45 = vadd.xlane.f32.xlu0 %v44_v12  ;;  %v373_v15 = vadd.f32 %v372_v13, %v371_v10 }
  0x2e   :  { %v380_v16 = vadd.f32 %v379_v14, %v378_v11 }
  0x2f   :  { %571 = vmatmul.mubr.msk.f32.vlgmr.msra.gmra.mrb[2].mxu0 %vm39_vm1, %v36_v1  ;;  %v374_v17 = vrot.slane %v373_v15, 1 }
  0x30   :  { %v381_v18 = vrot.slane %v380_v16, 1 }
  0x31   :  { %v375_v19 = vadd.f32 %v374_v17, %v373_v15 }
  0x32   :  { %v382_v20 = vadd.f32 %v381_v18, %v380_v16 }
  0x34   :  { %v383_v21 = vadd.f32 %v382_v20, %v375_v19 }
  0x36   :  { %v385_v22 = vmul.f32 %v383_v21, %v383_v21 }
  0x38   :  { %v387_v23 = vsel %vm386_vm2, %v385_v22, 0.0 }
  0x39   :  { %388 = vadd.xlane.f32.xlu0 %v387_v23 }
  0xb6   :  { %v42_v24 = vpop.xlane.xlu0 %41 }
  0xb7   :  { %v348_v25 = vsel %vm347_vm3, %v42_v24, 0.0 }
  0xb8   :  { %349 = vadd.xlane.f32.xlu1 %v348_v25 }
  0xba   :  { %v46_v26 = vpop.xlane.xlu0 %45 }
  0xbb   :  { %303 = vxpose.xlu0.b32.start.end [1/1] (short) (narrow) %v46_v26, 8  ;;  %v358_v27 = vsel %vm347_vm3, %v46_v26, 0.0 }
  0xbc   :  { %359 = vadd.xlane.f32.xlu1 %v358_v27 }
  0xc6   :  { %v389_v34 = vpop.xlane.xlu0 %388 }
  0xc7   :  { %v390_v35 = vrot.slane %v389_v34, 4 }
  0xc9   :  { %v391_v36 = vadd.f32 %v390_v35, %v389_v34 }
  0xcb   :  { %v392_v40 = vrot.slane %v391_v36, 2 }
  0xcd   :  { %v393_v46 = vadd.f32 %v392_v40, %v391_v36 }
  0xcf   :  { %v394_v51 = vrot.slane %v393_v46, 1 }
  0xd1   :  { %v395_v54 = vadd.f32 %v394_v51, %v393_v46 }
  0xef   :  { %263 = vxpose.xlu1.b32.start.end [1/1] (short) (narrow) %v42_v24, 8 }
  0xfe   :  { %v116_v28 = vpop.f32.mrb[0].mxu0  ;;  %v189_v30 = vpop.f32.mrb[0].mxu1 }
  0xff   :  { %v562_v29 = vpop.f32.mrb[1].mxu0  ;;  %v567_v31 = vpop.f32.mrb[1].mxu1  ;;  %v300_v0 = vmul.f32 2.0, %v116_v28  ;;  %v340_v1 = vmul.f32 2.0, %v189_v30 }
 0x102   :  { %v259_v32 = vpop.f32.mrb[2].mxu0 }
 0x103   :  { %v572_v33 = vpop.f32.mrb[3].mxu0  ;;  %v344_v4 = vmul.f32 2.0, %v259_v32 }
 0x13b   :  { %v319_v60 = vpop.trf.xlu0 }
 0x13c   :  { %v338_v62 = vrot.slane %v319_v60, %v297_v59 }
 0x13e   :  { %v339_v2 = vadd.f32 %v338_v62, %v46_v26  ;;  %v343_v3 = vadd.f32 %v338_v62, %v42_v24 }
 0x140   :  { %v341_v6 = vsub.f32 %v339_v2, %v340_v1  ;;  %v345_v7 = vsub.f32 %v343_v3, %v344_v4 }
 0x142   :  { %v342_v9 = vmax.f32 %v341_v6, 0.0  ;;  %v346_v10 = vmax.f32 %v345_v7, 0.0 }
 0x145   :  { %v350_v37 = vpop.xlane.xlu1 %349 }
 0x146   :  { %v351_v38 = vrot.slane %v350_v37, 4 }
 0x148   :  { %v352_v39 = vadd.f32 %v351_v38, %v350_v37 }
 0x149   :  { %v360_v41 = vpop.xlane.xlu1 %359 }
 0x14a   :  { %v353_v42 = vrot.slane %v352_v39, 2  ;;  %v361_v43 = vrot.slane %v360_v41, 4 }
 0x14c   :  { %v362_v44 = vadd.f32 %v361_v43, %v360_v41  ;;  %v354_v45 = vadd.f32 %v353_v42, %v352_v39 }
 0x14e   :  { %v363_v47 = vrot.slane %v362_v44, 2  ;;  %v355_v48 = vrot.slane %v354_v45, 1 }
 0x150   :  { %v356_v49 = vadd.f32 %v355_v48, %v354_v45  ;;  %v364_v50 = vadd.f32 %v363_v47, %v362_v44 }
 0x152   :  { %573 = vpush %v356_v49  ;;  %v365_v52 = vrot.slane %v364_v50, 1 }
 0x154   :  { %v366_v53 = vadd.f32 %v365_v52, %v364_v50 }
 0x156   :  { %575 = vpush %v366_v53 }
 0x157   :  { %577 = vpush %v395_v54 }
 0x16f   :  { %v279_v61 = vpop.trf.xlu1 }
 0x170   :  { %v298_v63 = vrot.slane %v279_v61, %v297_v59 }
 0x172   :  { %v299_v5 = vadd.f32 %v298_v63, %v42_v24 }
 0x174   :  { %v301_v8 = vsub.f32 %v299_v5, %v300_v0 }
 0x176   :  { %v302_v11 = vmax.f32 %v301_v8, 0.0 }
 0x183   :  { %s574_s1 = spop %573 }
 0x187   :  { %s576_s4 = spop %575 }
 0x188   :  { %s368_s5 = sadd.f32 %s576_s4, %s574_s1  ;;  %s578_s6 = spop %577 }
 0x189   :  { %s397_s7 = smul.f32 0.0078125, %s578_s6 }
 0x18a   :  { %s384_s8 = smul.f32 0.125, %s368_s5 }
 0x18c   :  { %s398_s9 = ssub.f32 %s384_s8, %s397_s7  ;;  %s656_s7 = scalar_lea.hbm %s752_s2, 16 }
 0x18d   :  { %p657_p2 = scmp.ne.s32.totalorder %s752_s2, %s656_s7  ;;  %p660_p3 = scmp.lt.u32.totalorder %s656_s7, %s752_s2 }
 0x18e   :  { %v399_v55 = vstv %s398_s9 }
 0x18f   :  { %604 = vrcp.f32 %v399_v55  ;;  %p662_p4 = pnand %p660_p3, %p657_p2 }
 0x199   :  { %v605_v56 = vpop.eup %604 }
 0x19a   :  { %579 = vpush %v605_v56 }
 0x1cb   :  { %s580_s10 = spop %579 }
 0x1cc   :  { %s402_s11 = smul.f32 -0.25, %s580_s10 }
 0x1ce   :  { %v403_v12 = vstv %s402_s11 }
 0x1cf   :  { %v404_v13 = vmul.f32 %v403_v12, %v302_v11  ;;  %v407_v14 = vmul.f32 %v403_v12, %v342_v9  ;;  %v410_v15 = vmul.f32 %v403_v12, %v346_v10 }
 0x1d1   :  { %v405_v16 = vmul.f32 1.442695, %v404_v13  ;;  %v408_v17 = vmul.f32 1.442695, %v407_v14  ;;  %v411_v18 = vmul.f32 1.442695, %v410_v15 }
 0x1d3   :  { %606 = vpow2.f32 %v405_v16 }
 0x1d4   :  { %608 = vpow2.f32 %v408_v17 }
 0x1d5   :  { %610 = vpow2.f32 %v411_v18 }
 0x1dd   :  { %v607_v19 = vpop.eup %606 }
 0x1de   :  { %v609_v20 = vpop.eup %608  ;;  %v413_v21 = vmul.f32 %v607_v19, %v607_v19  ;;  %v486_v35 = vsel %vm415_vm4, %v607_v19, 0.0 }
 0x1df   :  { %v611_v22 = vpop.eup %610  ;;  %v427_v23 = vmul.f32 %v609_v20, %v609_v20  ;;  %v497_v34 = vsel %vm415_vm4, %v609_v20, 0.0 }
 0x1e0   :  { %v453_v24 = vsel %vm415_vm4, %v413_v21, 0.0  ;;  %v440_v25 = vmul.f32 %v611_v22, %v611_v22  ;;  %v414_v29 = vmul.f32 %v413_v21, %v413_v21  ;;  %v508_v36 = vsel %vm415_vm4, %v611_v22, 0.0 }
 0x1e1   :  { %454 = vadd.xlane.f32.xlu0 %v453_v24  ;;  %v464_v26 = vsel %vm415_vm4, %v427_v23, 0.0  ;;  %v428_v27 = vmul.f32 %v427_v23, %v427_v23 }
 0x1e2   :  { %465 = vadd.xlane.f32.xlu1 %v464_v26  ;;  %v475_v28 = vsel %vm415_vm4, %v440_v25, 0.0  ;;  %v441_v31 = vmul.f32 %v440_v25, %v440_v25  ;;  %v416_v32 = vsel %vm415_vm4, %v414_v29, 0.0 }
 0x1e3   :  { %v429_v30 = vsel %vm415_vm4, %v428_v27, 0.0 }
 0x1e4   :  { %v442_v33 = vsel %vm415_vm4, %v441_v31, 0.0 }
 0x1e5   :  { %476 = vadd.xlane.f32.xlu0 %v475_v28 }
 0x1e6   :  { %430 = vadd.xlane.f32.xlu1 %v429_v30 }
 0x1e9   :  { %417 = vadd.xlane.f32.xlu0 %v416_v32 }
 0x1ea   :  { %443 = vadd.xlane.f32.xlu1 %v442_v33 }
 0x1ed   :  { %498 = vadd.xlane.f32.xlu0 %v497_v34 }
 0x1ee   :  { %487 = vadd.xlane.f32.xlu1 %v486_v35 }
 0x1f2   :  { %509 = vadd.xlane.f32.xlu1 %v508_v36 }
 0x26e   :  { %v455_v37 = vpop.xlane.xlu0 %454 }
 0x26f   :  { %v466_v38 = vpop.xlane.xlu1 %465  ;;  %v456_v39 = vrot.slane %v455_v37, 4 }
 0x270   :  { %v467_v40 = vrot.slane %v466_v38, 4 }
 0x271   :  { %v457_v44 = vadd.f32 %v456_v39, %v455_v37 }
 0x272   :  { %v477_v41 = vpop.xlane.xlu0 %476  ;;  %v468_v46 = vadd.f32 %v467_v40, %v466_v38 }
 0x273   :  { %v431_v42 = vpop.xlane.xlu1 %430  ;;  %v478_v43 = vrot.slane %v477_v41, 4  ;;  %v458_v52 = vrot.slane %v457_v44, 2 }
 0x274   :  { %v432_v45 = vrot.slane %v431_v42, 4  ;;  %v469_v55 = vrot.slane %v468_v46, 2 }
 0x275   :  { %v479_v47 = vadd.f32 %v478_v43, %v477_v41  ;;  %v459_v2 = vadd.f32 %v458_v52, %v457_v44 }
 0x276   :  { %v433_v48 = vadd.f32 %v432_v45, %v431_v42  ;;  %v418_v49 = vpop.xlane.xlu0 %417  ;;  %v470_v5 = vadd.f32 %v469_v55, %v468_v46 }
 0x277   :  { %v444_v50 = vpop.xlane.xlu1 %443  ;;  %v419_v51 = vrot.slane %v418_v49, 4  ;;  %v480_v56 = vrot.slane %v479_v47, 2  ;;  %v460_v16 = vrot.slane %v459_v2, 1 }
 0x278   :  { %v434_v53 = vrot.slane %v433_v48, 2  ;;  %v445_v54 = vrot.slane %v444_v50, 4  ;;  %v471_v19 = vrot.slane %v470_v5, 1 }
 0x279   :  { %v420_v57 = vadd.f32 %v419_v51, %v418_v49  ;;  %v481_v6 = vadd.f32 %v480_v56, %v479_v47  ;;  %v461_v27 = vadd.f32 %v460_v16, %v459_v2 }
 0x27a   :  { %v446_v58 = vadd.f32 %v445_v54, %v444_v50  ;;  %v499_v59 = vpop.xlane.xlu0 %498  ;;  %v435_v60 = vadd.f32 %v434_v53, %v433_v48  ;;  %v472_v29 = vadd.f32 %v471_v19, %v470_v5 }
 0x27b   :  { %v421_v61 = vrot.slane %v420_v57, 2  ;;  %v488_v62 = vpop.xlane.xlu1 %487  ;;  %v500_v63 = vrot.slane %v499_v59, 4  ;;  %v482_v20 = vrot.slane %v481_v6, 1 }
 0x27c   :  { %v447_v0 = vrot.slane %v446_v58, 2  ;;  %v489_v1 = vrot.slane %v488_v62, 4  ;;  %v436_v8 = vrot.slane %v435_v60, 1 }
 0x27d   :  { %v501_v3 = vadd.f32 %v500_v63, %v499_v59  ;;  %v422_v4 = vadd.f32 %v421_v61, %v420_v57  ;;  %v483_v31 = vadd.f32 %v482_v20, %v481_v6 }
 0x27e   :  { %v490_v7 = vadd.f32 %v489_v1, %v488_v62  ;;  %v448_v9 = vadd.f32 %v447_v0, %v446_v58  ;;  %v437_v22 = vadd.f32 %v436_v8, %v435_v60 }
 0x27f   :  { %v502_v10 = vrot.slane %v501_v3, 2  ;;  %v510_v11 = vpop.xlane.xlu1 %509  ;;  %v423_v12 = vrot.slane %v422_v4, 1 }
 0x280   :  { %v491_v13 = vrot.slane %v490_v7, 2  ;;  %v511_v14 = vrot.slane %v510_v11, 4  ;;  %v449_v15 = vrot.slane %v448_v9, 1 }
 0x281   :  { %v503_v17 = vadd.f32 %v502_v10, %v501_v3  ;;  %v424_v18 = vadd.f32 %v423_v12, %v422_v4 }
 0x282   :  { %v512_v21 = vadd.f32 %v511_v14, %v510_v11  ;;  %v450_v23 = vadd.f32 %v449_v15, %v448_v9  ;;  %v492_v24 = vadd.f32 %v491_v13, %v490_v7 }
 0x283   :  { %581 = vpush %v424_v18  ;;  %v504_v25 = vrot.slane %v503_v17, 1 }
 0x284   :  { %v513_v26 = vrot.slane %v512_v21, 2  ;;  %583 = vpush %v437_v22  ;;  %v493_v28 = vrot.slane %v492_v24, 1 }
 0x285   :  { %585 = vpush %v450_v23  ;;  %v505_v33 = vadd.f32 %v504_v25, %v503_v17 }
 0x286   :  { %v514_v30 = vadd.f32 %v513_v26, %v512_v21  ;;  %587 = vpush %v461_v27  ;;  %v494_v32 = vadd.f32 %v493_v28, %v492_v24 }
 0x287   :  { %589 = vpush %v472_v29 }
 0x288   :  { %591 = vpush %v483_v31  ;;  %v515_v34 = vrot.slane %v514_v30, 1 }
 0x289   :  { %593 = vpush %v494_v32 }
 0x28a   :  { %595 = vpush %v505_v33  ;;  %v516_v35 = vadd.f32 %v515_v34, %v514_v30 }
 0x28c   :  { %597 = vpush %v516_v35 }
 0x2b4   :  { %s582_s12 = spop %581 }
 0x2b5   :  { %s584_s13 = spop %583 }
 0x2b6   :  { %s586_s14 = spop %585 }
 0x2b7   :  { %s588_s15 = spop %587 }
 0x2b8   :  { %s463_s16 = sadd.f32 %s588_s15, %s582_s12  ;;  %s590_s17 = spop %589 }
 0x2b9   :  { %s474_s18 = sadd.f32 %s590_s17, %s584_s13  ;;  %s592_s19 = spop %591 }
 0x2ba   :  { %s485_s20 = sadd.f32 %s592_s19, %s586_s14  ;;  %s594_s21 = spop %593 }
 0x2bb   :  { %s496_s22 = sadd.f32 %s594_s21, %s463_s16  ;;  %s596_s23 = spop %595 }
 0x2bc   :  { %s507_s24 = sadd.f32 %s596_s23, %s474_s18 }
 0x2bd   :  { %s550_s25 = sadd.f32 -24.0, %s496_s22  ;;  %s598_s26 = spop %597 }
 0x2be   :  { %s551_s27 = sadd.f32 -24.0, %s507_s24 }
 0x2bf   :  { %s520_s28 = smul.f32 0.017857144, %s550_s25  ;;  %s518_s29 = sadd.f32 %s598_s26, %s485_s20 }
 0x2c0   :  { %s522_s30 = smul.f32 0.017857144, %s551_s27 }
 0x2c1   :  { %s524_s0 = smul.f32 0.03125, %s518_s29 }
 0x2c2   :  { %s523_s3 = sadd.f32 %s522_s30, %s520_s28 }
 0x2c4   :  { %s525_s1 = ssub.f32 %s523_s3, %s524_s0 }
 0x2c6   :  { %s526_s4 = sadd.f32 0.2857143, %s525_s1 }
 0x2c8   :  { %528 = sst [smem:[#allocation7]] %s526_s4 }
 0x2c9   :  { %665 = shalt.err (!%p662_p4)
}
 0x2ca   :  { %s676_s12 = smov [#allocation7]  }
 0x2cb   :  { %536 = dma.smem_to_hbm %s676_s12, 16, %s752_s2, [#allocation4]  }
 0x2cc   :  { %670 = dma.done.wait [#allocation4], 16  }
 0x2cd   :  { %671 = vsyncadd [#allocation4], 4294967280 }
 0x2ce   :  { %540 = sfence }
 0x2cf   :  { %541 = vsyncpa [#allocation3], 1 }
 0x2d0   :  { %542 = vsyncpa [#allocation6], 1 }
 0x2d1   :  { %543 = vsyncpa [#allocation4], 1 }

</bundles_post_ra>
